<compile_context>
chip_gen: v7x
topology: tpu7x:2x2x1
jax: 0.10.0
libtpu: 0.0.40
codegen_flags: <defaults>
</compile_context>

<pallas_src>
import functools

import jax
import jax.numpy as jnp
import numpy as np
from jax.experimental import pallas as pl
from jax.experimental.pallas import tpu as pltpu


def _class_std_train_kernel(x_ref, rm_ref, rv_ref,
                            out_ref, new_rm_ref, new_rv_ref):
    """Training-mode forward (per feat_dim tile):
       out = (x - mean(x,0)) / (var(x,0,unbiased) + 1e-5)
       new_running = 0.9*old + 0.1*batch_stat
    """
    x = x_ref[...].astype(jnp.float32)                        # [N, TILE_D]
    n = x.shape[0]
    # Single sweep over x: column sums and sums-of-squares in f32.
    s1 = jnp.sum(x, axis=0, keepdims=True)                    # [1, TILE_D]
    s2 = jnp.sum(x * x, axis=0, keepdims=True)                # [1, TILE_D]
    mean = s1 * jnp.float32(1.0 / n)
    # torch.var default is unbiased (divide by N-1); row-sized divide is cheap.
    # NOTE: n == 1 gives inf/nan, matching the PyTorch reference behavior.
    var = (s2 - s1 * mean) / jnp.float32(n - 1)

    # One reciprocal per column on the EUP, then a cheap N*D multiply on VPU.
    inv = pl.reciprocal(var + jnp.float32(1e-5), approx=False)
    out_ref[...] = ((x - mean) * inv).astype(out_ref.dtype)

    new_rm_ref[...] = (0.9 * rm_ref[...].astype(jnp.float32)
                       + 0.1 * mean).astype(new_rm_ref.dtype)
    new_rv_ref[...] = (0.9 * rv_ref[...].astype(jnp.float32)
                       + 0.1 * var).astype(new_rv_ref.dtype)


def _class_std_eval_kernel(x_ref, rm_ref, rv_ref, out_ref):
    """Eval-mode forward: out = (x - running_mean) / (running_var + 1e-5)."""
    x = x_ref[...].astype(jnp.float32)
    rm = rm_ref[...].astype(jnp.float32)
    inv = pl.reciprocal(rv_ref[...].astype(jnp.float32) + jnp.float32(1e-5),
                        approx=False)
    out_ref[...] = ((x - rm) * inv).astype(out_ref.dtype)


def _choose_tile_d(num_classes, feat_dim, itemsize):
    """Pick a lane-dense tile width along feat_dim.

    Targets ~4 MiB of f32 working set per tile so double-buffered in/out tiles
    plus temporaries stay comfortably under the scoped VMEM limit on all chips
    (v5e/v6e 128 MiB, v7x 64 MiB physical)."""
    per_col_bytes = num_classes * max(int(itemsize), 4)
    max_cols = max(128, (4 * 1024 * 1024) // max(per_col_bytes, 1))
    if feat_dim <= max_cols:
        return feat_dim                       # full-extent block: always legal
    return max(128, min(2048, (max_cols // 128) * 128))


@functools.partial(jax.jit, static_argnames=("training",))
def class_standardization(class_feats, running_mean, running_var, *, training=True):
    """JAX/Pallas equivalent of ClassStandardization.forward.

    Args:
      class_feats:  [num_classes, feat_dim]
      running_mean: [feat_dim]
      running_var:  [feat_dim]
      training:     if True, returns (result, new_running_mean, new_running_var);
                    if False, returns result only.
    """
    num_classes, feat_dim = class_feats.shape
    rm2 = running_mean.reshape(1, feat_dim)
    rv2 = running_var.reshape(1, feat_dim)

    itemsize = jnp.dtype(class_feats.dtype).itemsize
    tile_d = _choose_tile_d(num_classes, feat_dim, itemsize)
    num_tiles = pl.cdiv(feat_dim, tile_d)

    # Feature-dim tiles; the class-axis reduction lives entirely inside a tile.
    x_spec = pl.BlockSpec((num_classes, tile_d), lambda j: (0, j))
    row_spec = pl.BlockSpec((1, tile_d), lambda j: (0, j))

    # VMEM budget: double-buffered in+out tiles + stat rows + slack.
    tile_bytes = num_classes * tile_d * max(int(itemsize), 4)
    est = 4 * tile_bytes + 12 * tile_d * 4 + (1 << 20)
    vmem_limit = int(min(max(est, 32 * 1024 * 1024), 48 * 1024 * 1024))

    compiler_params = pltpu.CompilerParams(
        dimension_semantics=("parallel",),      # feat_dim tiles are independent
        vmem_limit_bytes=vmem_limit,
    )

    if training:
        out, new_rm, new_rv = pl.pallas_call(
            _class_std_train_kernel,
            grid=(num_tiles,),
            in_specs=[x_spec, row_spec, row_spec],
            out_specs=(x_spec, row_spec, row_spec),
            out_shape=(
                jax.ShapeDtypeStruct((num_classes, feat_dim), class_feats.dtype),
                jax.ShapeDtypeStruct((1, feat_dim), running_mean.dtype),
                jax.ShapeDtypeStruct((1, feat_dim), running_var.dtype),
            ),
            # Alias running stats in-place: rm2 -> new_rm, rv2 -> new_rv.
            input_output_aliases={1: 1, 2: 2},
            compiler_params=compiler_params,
        )(class_feats, rm2, rv2)
        return out, new_rm.reshape(feat_dim), new_rv.reshape(feat_dim)
    else:
        out = pl.pallas_call(
            _class_std_eval_kernel,
            grid=(num_tiles,),
            in_specs=[x_spec, row_spec, row_spec],
            out_specs=x_spec,
            out_shape=jax.ShapeDtypeStruct((num_classes, feat_dim), class_feats.dtype),
            compiler_params=compiler_params,
        )(class_feats, rm2, rv2)
        return out


def _reference_train(x, rm, rv):
    mean = x.mean(axis=0)
    var = x.var(axis=0, ddof=1)  # torch unbiased var
    out = (x - mean[None, :]) / (var[None, :] + 1e-5)
    return out, 0.9 * rm + 0.1 * mean, 0.9 * rv + 0.1 * var


if __name__ == "__main__":
    key = jax.random.PRNGKey(0)
    num_classes, feat_dim = 16, 32

    class_feats = jax.random.normal(key, (num_classes, feat_dim), dtype=jnp.float32)
    # Deterministic parameter init matching nn.Parameter(zeros / ones).
    running_mean = jnp.zeros((feat_dim,), dtype=jnp.float32)
    running_var = jnp.ones((feat_dim,), dtype=jnp.float32)

    # Training-mode forward (hot path in the Pallas kernel).
    out, new_rm, new_rv = class_standardization(
        class_feats, running_mean, running_var, training=True)
    jax.block_until_ready((out, new_rm, new_rv))

    # Eval-mode forward (uses running stats).
    out_eval = class_standardization(
        class_feats, new_rm, new_rv, training=False)
    jax.block_until_ready(out_eval)

    # Correctness check against a pure-numpy reference.
    x_np = np.asarray(class_feats)
    ref_out, ref_rm, ref_rv = _reference_train(
        x_np, np.asarray(running_mean), np.asarray(running_var))
    assert np.allclose(np.asarray(out), ref_out, rtol=1e-5, atol=1e-5)
    assert np.allclose(np.asarray(new_rm), ref_rm, rtol=1e-5, atol=1e-6)
    assert np.allclose(np.asarray(new_rv), ref_rv, rtol=1e-5, atol=1e-6)
    ref_eval = (x_np - ref_rm[None, :]) / (ref_rv[None, :] + 1e-5)
    assert np.allclose(np.asarray(out_eval), ref_eval, rtol=1e-5, atol=1e-5)

    print("KERNEL_OK")
</pallas_src>

<mosaic_0001>
module attributes {stable_mosaic.version = 11 : i64} {
  func.func @_class_std_train_kernel(%arg0: i32, %arg1: memref<16x32xf32, #tpu.memory_space<vmem>>, %arg2: memref<1x32xf32, #tpu.memory_space<vmem>>, %arg3: memref<1x32xf32, #tpu.memory_space<vmem>>, %arg4: memref<16x32xf32, #tpu.memory_space<vmem>>, %arg5: memref<1x32xf32, #tpu.memory_space<vmem>>, %arg6: memref<1x32xf32, #tpu.memory_space<vmem>>) attributes {dimension_semantics = [#tpu.dimension_semantics<parallel>], iteration_bounds = array<i64: 1>, scalar_prefetch = 0 : i64, scratch_operands = 0 : i64, tpu.core_type = #tpu.core_type<tc>, window_params = [{transform_indices = @transform_0, window_bounds = array<i64: 16, 32>}, {transform_indices = @transform_1, window_bounds = array<i64: 1, 32>}, {transform_indices = @transform_2, window_bounds = array<i64: 1, 32>}, {transform_indices = @transform_3, window_bounds = array<i64: 16, 32>}, {transform_indices = @transform_4, window_bounds = array<i64: 1, 32>}, {transform_indices = @transform_5, window_bounds = array<i64: 1, 32>}]} {
    %c0 = arith.constant 0 : index
    %c0_0 = arith.constant 0 : index
    %0 = vector.load %arg1[%c0, %c0_0] : memref<16x32xf32, #tpu.memory_space<vmem>>, vector<16x32xf32>
    %cst = arith.constant dense<0.000000e+00> : vector<32xf32>
    %1 = vector.multi_reduction <add>, %0, %cst [0] : vector<16x32xf32> to vector<32xf32>
    %2 = vector.shape_cast %1 : vector<32xf32> to vector<1x32xf32>
    %3 = arith.mulf %0, %0 : vector<16x32xf32>
    %cst_1 = arith.constant dense<0.000000e+00> : vector<32xf32>
    %4 = vector.multi_reduction <add>, %3, %cst_1 [0] : vector<16x32xf32> to vector<32xf32>
    %5 = vector.shape_cast %4 : vector<32xf32> to vector<1x32xf32>
    %cst_2 = arith.constant 6.250000e-02 : f32
    %6 = vector.broadcast %cst_2 : f32 to vector<1x32xf32>
    %7 = arith.mulf %2, %6 : vector<1x32xf32>
    %8 = arith.mulf %2, %7 : vector<1x32xf32>
    %9 = arith.subf %5, %8 : vector<1x32xf32>
    %cst_3 = arith.constant 1.500000e+01 : f32
    %10 = vector.broadcast %cst_3 : f32 to vector<1x32xf32>
    %11 = arith.divf %9, %10 : vector<1x32xf32>
    %cst_4 = arith.constant 9.99999974E-6 : f32
    %12 = vector.broadcast %cst_4 : f32 to vector<1x32xf32>
    %13 = arith.addf %11, %12 : vector<1x32xf32>
    %14 = tpu.reciprocal %13 : vector<1x32xf32> -> vector<1x32xf32>
    %15 = vector.broadcast %7 : vector<1x32xf32> to vector<16x32xf32>
    %16 = arith.subf %0, %15 : vector<16x32xf32>
    %17 = vector.broadcast %14 : vector<1x32xf32> to vector<16x32xf32>
    %18 = arith.mulf %16, %17 : vector<16x32xf32>
    %c0_5 = arith.constant 0 : index
    %c0_6 = arith.constant 0 : index
    %19 = vector.load %arg4[%c0_5, %c0_6] : memref<16x32xf32, #tpu.memory_space<vmem>>, vector<16x32xf32>
    tpu.vector_store %arg4[%c0_5, %c0_6], %18 {strides = array<i32>} : memref<16x32xf32, #tpu.memory_space<vmem>>, vector<16x32xf32>,
    %c0_7 = arith.constant 0 : index
    %c0_8 = arith.constant 0 : index
    %20 = vector.load %arg2[%c0_7, %c0_8] : memref<1x32xf32, #tpu.memory_space<vmem>>, vector<1x32xf32>
    %cst_9 = arith.constant 0.899999976 : f32
    %21 = vector.broadcast %cst_9 : f32 to vector<1x32xf32>
    %22 = arith.mulf %21, %20 : vector<1x32xf32>
    %cst_10 = arith.constant 1.000000e-01 : f32
    %23 = vector.broadcast %cst_10 : f32 to vector<1x32xf32>
    %24 = arith.mulf %23, %7 : vector<1x32xf32>
    %25 = arith.addf %22, %24 : vector<1x32xf32>
    %c0_11 = arith.constant 0 : index
    %c0_12 = arith.constant 0 : index
    %26 = vector.load %arg5[%c0_11, %c0_12] : memref<1x32xf32, #tpu.memory_space<vmem>>, vector<1x32xf32>
    tpu.vector_store %arg5[%c0_11, %c0_12], %25 {strides = array<i32>} : memref<1x32xf32, #tpu.memory_space<vmem>>, vector<1x32xf32>,
    %c0_13 = arith.constant 0 : index
    %c0_14 = arith.constant 0 : index
    %27 = vector.load %arg3[%c0_13, %c0_14] : memref<1x32xf32, #tpu.memory_space<vmem>>, vector<1x32xf32>
    %cst_15 = arith.constant 0.899999976 : f32
    %28 = vector.broadcast %cst_15 : f32 to vector<1x32xf32>
    %29 = arith.mulf %28, %27 : vector<1x32xf32>
    %cst_16 = arith.constant 1.000000e-01 : f32
    %30 = vector.broadcast %cst_16 : f32 to vector<1x32xf32>
    %31 = arith.mulf %30, %11 : vector<1x32xf32>
    %32 = arith.addf %29, %31 : vector<1x32xf32>
    %c0_17 = arith.constant 0 : index
    %c0_18 = arith.constant 0 : index
    %33 = vector.load %arg6[%c0_17, %c0_18] : memref<1x32xf32, #tpu.memory_space<vmem>>, vector<1x32xf32>
    tpu.vector_store %arg6[%c0_17, %c0_18], %32 {strides = array<i32>} : memref<1x32xf32, #tpu.memory_space<vmem>>, vector<1x32xf32>,
    return
  }
  func.func @transform_0(%arg0: i32) -> (i32, i32) {
    %c0_i32 = arith.constant 0 : i32
    %c0_i32_0 = arith.constant 0 : i32
    return %c0_i32, %arg0 : i32, i32
  }
  func.func @transform_1(%arg0: i32) -> (i32, i32) {
    %c0_i32 = arith.constant 0 : i32
    %c0_i32_0 = arith.constant 0 : i32
    return %c0_i32, %arg0 : i32, i32
  }
  func.func @transform_2(%arg0: i32) -> (i32, i32) {
    %c0_i32 = arith.constant 0 : i32
    %c0_i32_0 = arith.constant 0 : i32
    return %c0_i32, %arg0 : i32, i32
  }
  func.func @transform_3(%arg0: i32) -> (i32, i32) {
    %c0_i32 = arith.constant 0 : i32
    %c0_i32_0 = arith.constant 0 : i32
    return %c0_i32, %arg0 : i32, i32
  }
  func.func @transform_4(%arg0: i32) -> (i32, i32) {
    %c0_i32 = arith.constant 0 : i32
    %c0_i32_0 = arith.constant 0 : i32
    return %c0_i32, %arg0 : i32, i32
  }
  func.func @transform_5(%arg0: i32) -> (i32, i32) {
    %c0_i32 = arith.constant 0 : i32
    %c0_i32_0 = arith.constant 0 : i32
    return %c0_i32, %arg0 : i32, i32
  }
}

</mosaic_0001>

<bundles_post_ra>
// kernel: class_standardization.1
= control target key start
LH: loop header
LB: loop body
LE: loop exit
PB: predicated region body
PF: predicated region fallthrough
CT: control target
= control target key end

     0   :  { %vm20_vm0 = vcmask 261120   ;;  %s187_s0 = inlined_call_operand.vmem [shape: f32[16,32], index: 0, kind: input, shape index: {}]   ;;  %s188_s1 = inlined_call_operand.vmem [shape: f32[1,32], index: 1, kind: input, shape index: {}, may-alias: {1,4}]   ;;  %s189_s2 = inlined_call_operand.vmem [shape: f32[1,32], index: 2, kind: input, shape index: {}, may-alias: {2,5}]   ;;  %s190_s3 = inlined_call_operand.hbm [shape: f32[16,32], index: 3, kind: output, shape index: {0}]   ;;  %s191_s4 = inlined_call_operand.vmem [shape: f32[1,32], index: 4, kind: output, shape index: {1}, may-alias: {1,4}]   ;;  %s192_s5 = inlined_call_operand.vmem [shape: f32[1,32], index: 5, kind: output, shape index: {2}, may-alias: {2,5}]  }
   0x1   :  { %v18_v0 = vld [vmem:[%s187_s0] sm:$0xff]  ;;  %v19_v1 = vld [vmem:[%s187_s0 + $0x8] sm:$0xff] }
   0x2   :  { %v21_v2 = vsel %vm20_vm0, %v18_v0, 0.0  ;;  %v22_v3 = vsel %vm20_vm0, %v19_v1, 0.0  ;;  %v30_v4 = vmul.f32 %v18_v0, %v18_v0  ;;  %v31_v5 = vmul.f32 %v19_v1, %v19_v1 }
   0x3   :  { %11 = vsyncpa [#allocation3], 0  ;;  %v23_v6 = vadd.f32 %v22_v3, %v21_v2  ;;  %v54_v19 = vld [vmem:[%s188_s1] sm:$0x1]  ;;  %vm58_vm1 = vcmask 253952   ;;  %s118_s28 = smov [#allocation2]  }
   0x4   :  { %v32_v7 = vsel %vm20_vm0, %v30_v4, 0.0  ;;  %v33_v8 = vsel %vm20_vm0, %v31_v5, 0.0  ;;  %v55_v24 = vmul.f32 0.9, %v54_v19  ;;  %v60_v27 = vld [vmem:[%s189_s2] sm:$0x1] }
   0x5   :  { %v24_v9 = vrot.slane %v23_v6, 4  ;;  %v34_v10 = vadd.f32 %v33_v8, %v32_v7  ;;  %v61_v31 = vmul.f32 0.9, %v60_v27  ;;  %s70_s2 = sshll.u32 %s118_s28, 4  ;;  %s71_s2 = int_to_ptr.vmem [resolvable:$true] %s70_s2 }
   0x6   :  { %p99_p1 = scmp.lt.s32.totalorder %s71_s2, %s71_s2 }
   0x7   :  { %v25_v11 = vadd.f32 %v24_v9, %v23_v6  ;;  %v35_v12 = vrot.slane %v34_v10, 4 }
   0x9   :  { %v26_v13 = vrot.slane %v25_v11, 2  ;;  %v36_v14 = vadd.f32 %v35_v12, %v34_v10 }
   0xb   :  { %v27_v15 = vadd.f32 %v26_v13, %v25_v11  ;;  %v37_v16 = vrot.slane %v36_v14, 2 }
   0xd   :  { %v28_v17 = vrot.slane %v27_v15, 1  ;;  %v38_v18 = vadd.f32 %v37_v16, %v36_v14 }
   0xf   :  { %v29_v20 = vadd.f32 %v28_v17, %v27_v15  ;;  %v39_v21 = vrot.slane %v38_v18, 1 }
  0x11   :  { %v40_v22 = vadd.f32 %v39_v21, %v38_v18  ;;  %v41_v23 = vmul.f32 0.0625, %v29_v20 }
  0x13   :  { %v42_v25 = vmul.f32 %v41_v23, %v29_v20  ;;  %v56_v26 = vmul.f32 0.1, %v41_v23  ;;  %v48_v35 = vsub.f32 %v18_v0, %v41_v23  ;;  %v49_v36 = vsub.f32 %v19_v1, %v41_v23 }
  0x15   :  { %v43_v28 = vsub.f32 %v40_v22, %v42_v25  ;;  %v57_v29 = vadd.f32 %v56_v26, %v55_v24 }
  0x17   :  { %v45_v30 = vmul.f32 0.06666667, %v43_v28  ;;  %59 = vst.msk [vmem:[%s191_s4] sm:$0x1] %vm58_vm1, %v57_v29  ;;  %s94_s4 = scalar_lea.vmem %s71_s2, 256 }
  0x18   :  { %p95_p0 = scmp.ne.s32.totalorder %s71_s2, %s94_s4  ;;  %p100_p2 = scmp.lt.s32.totalorder %s94_s4, %s94_s4 }
  0x19   :  { %v46_v32 = vadd.f32 1e-05, %v45_v30  ;;  %v62_v33 = vmul.f32 0.1, %v45_v30 }
  0x1a   :  { %p101_p3 = por %p100_p2, %p99_p1 }
  0x1b   :  { %92 = vrcp.f32 %v46_v32  ;;  %v63_v34 = vadd.f32 %v62_v33, %v61_v31 }
  0x1c   :  { %p102_p4 = pnand %p101_p3, %p95_p0 }
  0x1d   :  { %64 = vst.msk [vmem:[%s192_s5] sm:$0x1] %vm58_vm1, %v63_v34 }
  0x25   :  { %v93_v37 = vpop.eup %92 }
  0x26   :  { %v50_v38 = vmul.f32 %v93_v37, %v48_v35  ;;  %v51_v39 = vmul.f32 %v93_v37, %v49_v36 }
  0x28   :  { %52 = vst.msk [vmem:[#allocation2] sm:$0xff] %vm20_vm0, %v50_v38  ;;  %53 = vst.msk [vmem:[#allocation2 + $0x8] sm:$0xff] %vm20_vm0, %v51_v39 }
  0x29   :  { %105 = shalt.err (!%p102_p4)
}
  0x2a   :  { %s106_s30 = scalar_lea.hbm %s190_s3, 256 }
  0x2b   :  { %p107_p5 = scmp.ne.s32.totalorder %s190_s3, %s106_s30  ;;  %p110_p6 = scmp.lt.u32.totalorder %s106_s30, %s190_s3 }
  0x2d   :  { %p112_p7 = pnand %p110_p6, %p107_p5 }
  0x2f   :  { %115 = shalt.err (!%p112_p7)
}
  0x30   :  { %s119_s10 = smov 128   ;;  %s120_s11 = smov 8  }
  0x31   :  { %76 = dma.vmem_to_hbm [thread:$0]  %s71_s2, 256, %s190_s3, [#allocation3], %s119_s10, %s119_s10, %s120_s11  }
  0x32   :  { %116 = dma.done.wait [#allocation3], 256  }
  0x33   :  { %117 = vsyncadd [#allocation3], 4294967040 }
  0x34   :  { %88 = vsyncpa [#allocation3], 1 }

</bundles_post_ra>
